<compile_context>
chip_gen: v7x
topology: tpu7x:2x2x1
jax: 0.10.0
libtpu: 0.0.40
codegen_flags: <defaults>
</compile_context>

<pallas_src>
import jax
import jax.numpy as jnp
from jax.experimental import pallas as pl
from jax.experimental.pallas import tpu as pltpu


def _householder_kernel(trig_ref, z_ref, o_ref):
    x = z_ref[0]                   # (TC, TS)
    y = z_ref[1]                   # (TC, TS)
    sin_h = trig_ref[0]            # (TC, 1) -> broadcasts over lanes
    cos_h = trig_ref[1]
    sin_t = trig_ref[2]
    cos_t = trig_ref[3]

    selector = x * sin_h - y * cos_h
    a2 = x * cos_t + y * sin_t
    b2 = x * sin_t - y * cos_t
    reflect = selector > 0

    o_ref[0] = jnp.where(reflect, a2, x)   # a half
    o_ref[1] = jnp.where(reflect, b2, y)   # b half


def _sublane_align(dtype):
    """Minimum sublane multiple for this dtype (8 f32, 16 bf16, 32 int8/fp8)."""
    itemsize = jnp.dtype(dtype).itemsize
    return max(8, 32 // max(itemsize, 1))


def _pick_tile(dim, limit, align):
    """Largest tile <= limit that divides `dim` and is a multiple of `align`;
    falls back to the full dim when no aligned divisor exists."""
    if dim % align != 0 or dim <= align:
        return dim
    t = min(limit, dim)
    t -= t % align
    t = max(t, align)
    while dim % t != 0:
        t -= align
    return t


def householder_forward(z, theta, *, vmem_budget_bytes=24 << 20):
    """z: (N, C, H, W); theta: (1, C//2, 1, 1). Matches HouseHolder.forward (axis=1)."""
    N, C, H, W = z.shape
    assert C % 2 == 0
    Ceff = C // 2
    S = H * W

    # Contiguous (no-copy) view: channels split -> (N, 2, Ceff, S).
    z4 = z.reshape(N, 2, Ceff, S)

    # Pad ragged spatial sizes up to a lane multiple (avoids masked partial stores).
    S_pad = S
    if S % 128 != 0:
        S_pad = ((S + 127) // 128) * 128
        z4 = jnp.pad(z4, ((0, 0), (0, 0), (0, 0), (0, S_pad - S)))

    # Trig hoisted out of the kernel; computed in f32 (precision of the branch selector),
    # cast to z.dtype, packed into one (4, Ceff, 1) operand.
    th = theta.reshape(Ceff).astype(jnp.float32)
    trig = jnp.stack(
        [jnp.sin(0.5 * th), jnp.cos(0.5 * th), jnp.sin(th), jnp.cos(th)], axis=0
    ).reshape(4, Ceff, 1).astype(z.dtype)

    itemsize = jnp.dtype(z.dtype).itemsize
    align_c = _sublane_align(z.dtype)

    # Live VMEM ~= 8 * TC * TS * itemsize (2-half input + 2-half output, both
    # double-buffered). Keep that under `vmem_budget_bytes` so it fits every generation
    # (v7x: 64 MiB physical) while moving ~4*TC*TS*itemsize HBM bytes per grid step.
    budget_elems = max(8 * 128, vmem_budget_bytes // (8 * itemsize))

    # Grow the lane/spatial tile first (contiguous DMA bursts, lane-dense stores),
    # then the channel tile with whatever element budget remains.
    TS = _pick_tile(S_pad, max(128, budget_elems // align_c), 128)
    TC = _pick_tile(Ceff, max(align_c, budget_elems // TS), align_c)
    # TODO(synk): if Ceff is large and not a multiple of the sublane alignment, the
    # full-Ceff fallback above can exceed the VMEM budget; a padded channel layout
    # would be needed for that (unusual) shape.

    # Keep >= 2 grid steps when possible so v7x's two TensorCores both get work.
    if N * (Ceff // TC) * (S_pad // TS) < 2:
        if TS >= 256 and TS % 256 == 0:
            TS //= 2
        elif TC >= 2 * align_c and TC % (2 * align_c) == 0:
            TC //= 2

    grid = (N, Ceff // TC, S_pad // TS)

    trig_spec = pl.BlockSpec((4, TC, 1), lambda n, c, s: (0, c, 0))
    z_spec = pl.BlockSpec((None, 2, TC, TS), lambda n, c, s: (n, 0, c, s))
    out_spec = pl.BlockSpec((None, 2, TC, TS), lambda n, c, s: (n, 0, c, s))

    out = pl.pallas_call(
        _householder_kernel,
        out_shape=jax.ShapeDtypeStruct((N, 2, Ceff, S_pad), z.dtype),
        grid=grid,
        in_specs=[trig_spec, z_spec],
        out_specs=out_spec,
        compiler_params=pltpu.CompilerParams(
            dimension_semantics=("parallel", "parallel", "parallel"),
            vmem_limit_bytes=48 * 1024 * 1024,  # > v5e's 16 MiB default, < v7x physical
        ),
    )(trig, z4)

    if S_pad != S:
        out = out[..., :S]
    # Contiguous reshape: halves stacked along channel == torch.cat(dim=1).
    return out.reshape(N, C, H, W)


def _householder_reference(z, theta):
    Ceff = z.shape[1] // 2
    x, y = z[:, :Ceff], z[:, Ceff:]
    selector = x * jnp.sin(0.5 * theta) - y * jnp.cos(0.5 * theta)
    a2 = x * jnp.cos(theta) + y * jnp.sin(theta)
    b2 = x * jnp.sin(theta) - y * jnp.cos(theta)
    a = jnp.where(selector > 0, a2, x)
    b = jnp.where(selector > 0, b2, y)
    return jnp.concatenate([a, b], axis=1)


if __name__ == "__main__":
    key = jax.random.PRNGKey(0)
    k1, k2, k3, k4 = jax.random.split(key, 4)

    # Case 1: shape implied by the module (theta init = pi/2): batch=2, channels=4, 16x16.
    N, C, H, W = 2, 4, 16, 16
    z = jax.random.normal(k1, (N, C, H, W), dtype=jnp.float32)
    theta = 0.5 * jnp.pi * jnp.ones((1, C // 2, 1, 1), dtype=jnp.float32)
    out = jax.block_until_ready(householder_forward(z, theta))
    ref = _householder_reference(z, theta)
    assert out.shape == (N, C, H, W)
    assert jnp.allclose(out, ref, atol=1e-5, rtol=1e-5)

    # Case 2: multi-step grid with aligned channel tiles (Ceff=8, S=1024).
    N2, C2, H2, W2 = 2, 16, 32, 32
    z2 = jax.random.normal(k2, (N2, C2, H2, W2), dtype=jnp.float32)
    theta2 = jax.random.normal(k3, (1, C2 // 2, 1, 1), dtype=jnp.float32)
    out2 = jax.block_until_ready(householder_forward(z2, theta2))
    ref2 = _householder_reference(z2, theta2)
    assert out2.shape == (N2, C2, H2, W2)
    assert jnp.allclose(out2, ref2, atol=1e-5, rtol=1e-5)

    # Case 3: ragged spatial size (7x7 -> padded lane dim) exercising the padding path.
    N3, C3, H3, W3 = 1, 4, 7, 7
    z3 = jax.random.normal(k4, (N3, C3, H3, W3), dtype=jnp.float32)
    theta3 = 0.5 * jnp.pi * jnp.ones((1, C3 // 2, 1, 1), dtype=jnp.float32)
    out3 = jax.block_until_ready(householder_forward(z3, theta3))
    ref3 = _householder_reference(z3, theta3)
    assert out3.shape == (N3, C3, H3, W3)
    assert jnp.allclose(out3, ref3, atol=1e-5, rtol=1e-5)

    print("KERNEL_OK")
</pallas_src>

<mosaic_0001>
module attributes {stable_mosaic.version = 11 : i64} {
  func.func @_householder_kernel(%arg0: i32, %arg1: i32, %arg2: i32, %arg3: memref<4x2x1xf32, #tpu.memory_space<vmem>>, %arg4: memref<1x2x2x256xf32, #tpu.memory_space<vmem>>, %arg5: memref<1x2x2x256xf32, #tpu.memory_space<vmem>>) attributes {dimension_semantics = [#tpu.dimension_semantics<parallel>, #tpu.dimension_semantics<parallel>, #tpu.dimension_semantics<parallel>], iteration_bounds = array<i64: 2, 1, 1>, scalar_prefetch = 0 : i64, scratch_operands = 0 : i64, tpu.core_type = #tpu.core_type<tc>, window_params = [{transform_indices = @transform_0, window_bounds = array<i64: 4, 2, 1>}, {transform_indices = @transform_1, window_bounds = array<i64: 1, 2, 2, 256>}, {transform_indices = @transform_2, window_bounds = array<i64: 1, 2, 2, 256>}]} {
    %c0 = arith.constant 0 : index
    %c0_0 = arith.constant 0 : index
    %c0_1 = arith.constant 0 : index
    %c0_2 = arith.constant 0 : index
    %0 = vector.load %arg4[%c0, %c0_0, %c0_1, %c0_2] : memref<1x2x2x256xf32, #tpu.memory_space<vmem>>, vector<1x1x2x256xf32>
    %1 = vector.shape_cast %0 : vector<1x1x2x256xf32> to vector<2x256xf32>
    %c0_3 = arith.constant 0 : index
    %c1 = arith.constant 1 : index
    %c0_4 = arith.constant 0 : index
    %c0_5 = arith.constant 0 : index
    %2 = vector.load %arg4[%c0_3, %c1, %c0_4, %c0_5] : memref<1x2x2x256xf32, #tpu.memory_space<vmem>>, vector<1x1x2x256xf32>
    %3 = vector.shape_cast %2 : vector<1x1x2x256xf32> to vector<2x256xf32>
    %c0_6 = arith.constant 0 : index
    %c0_7 = arith.constant 0 : index
    %c0_8 = arith.constant 0 : index
    %4 = vector.load %arg3[%c0_6, %c0_7, %c0_8] : memref<4x2x1xf32, #tpu.memory_space<vmem>>, vector<1x2x1xf32>
    %5 = vector.shape_cast %4 : vector<1x2x1xf32> to vector<2x1xf32>
    %c1_9 = arith.constant 1 : index
    %c0_10 = arith.constant 0 : index
    %c0_11 = arith.constant 0 : index
    %6 = vector.load %arg3[%c1_9, %c0_10, %c0_11] : memref<4x2x1xf32, #tpu.memory_space<vmem>>, vector<1x2x1xf32>
    %7 = vector.shape_cast %6 : vector<1x2x1xf32> to vector<2x1xf32>
    %c2 = arith.constant 2 : index
    %c0_12 = arith.constant 0 : index
    %c0_13 = arith.constant 0 : index
    %8 = vector.load %arg3[%c2, %c0_12, %c0_13] : memref<4x2x1xf32, #tpu.memory_space<vmem>>, vector<1x2x1xf32>
    %9 = vector.shape_cast %8 : vector<1x2x1xf32> to vector<2x1xf32>
    %c3 = arith.constant 3 : index
    %c0_14 = arith.constant 0 : index
    %c0_15 = arith.constant 0 : index
    %10 = vector.load %arg3[%c3, %c0_14, %c0_15] : memref<4x2x1xf32, #tpu.memory_space<vmem>>, vector<1x2x1xf32>
    %11 = vector.shape_cast %10 : vector<1x2x1xf32> to vector<2x1xf32>
    %12 = vector.broadcast %5 : vector<2x1xf32> to vector<2x256xf32>
    %13 = arith.mulf %1, %12 : vector<2x256xf32>
    %14 = vector.broadcast %7 : vector<2x1xf32> to vector<2x256xf32>
    %15 = arith.mulf %3, %14 : vector<2x256xf32>
    %16 = arith.subf %13, %15 : vector<2x256xf32>
    %17 = vector.broadcast %11 : vector<2x1xf32> to vector<2x256xf32>
    %18 = arith.mulf %1, %17 : vector<2x256xf32>
    %19 = vector.broadcast %9 : vector<2x1xf32> to vector<2x256xf32>
    %20 = arith.mulf %3, %19 : vector<2x256xf32>
    %21 = arith.addf %18, %20 : vector<2x256xf32>
    %22 = vector.broadcast %9 : vector<2x1xf32> to vector<2x256xf32>
    %23 = arith.mulf %1, %22 : vector<2x256xf32>
    %24 = vector.broadcast %11 : vector<2x1xf32> to vector<2x256xf32>
    %25 = arith.mulf %3, %24 : vector<2x256xf32>
    %26 = arith.subf %23, %25 : vector<2x256xf32>
    %cst = arith.constant 0.000000e+00 : f32
    %27 = vector.broadcast %cst : f32 to vector<2x256xf32>
    %28 = arith.cmpf ogt, %16, %27 : vector<2x256xf32>
    %29 = arith.select %28, %21, %1 : vector<2x256xi1>, vector<2x256xf32>
    %c0_16 = arith.constant 0 : index
    %c0_17 = arith.constant 0 : index
    %c0_18 = arith.constant 0 : index
    %c0_19 = arith.constant 0 : index
    %30 = vector.load %arg5[%c0_16, %c0_17, %c0_18, %c0_19] : memref<1x2x2x256xf32, #tpu.memory_space<vmem>>, vector<1x1x2x256xf32>
    %31 = vector.shape_cast %30 : vector<1x1x2x256xf32> to vector<2x256xf32>
    %32 = vector.shape_cast %29 : vector<2x256xf32> to vector<1x1x2x256xf32>
    tpu.vector_store %arg5[%c0_16, %c0_17, %c0_18, %c0_19], %32 {strides = array<i32>} : memref<1x2x2x256xf32, #tpu.memory_space<vmem>>, vector<1x1x2x256xf32>,
    %33 = arith.select %28, %26, %3 : vector<2x256xi1>, vector<2x256xf32>
    %c0_20 = arith.constant 0 : index
    %c1_21 = arith.constant 1 : index
    %c0_22 = arith.constant 0 : index
    %c0_23 = arith.constant 0 : index
    %34 = vector.load %arg5[%c0_20, %c1_21, %c0_22, %c0_23] : memref<1x2x2x256xf32, #tpu.memory_space<vmem>>, vector<1x1x2x256xf32>
    %35 = vector.shape_cast %34 : vector<1x1x2x256xf32> to vector<2x256xf32>
    %36 = vector.shape_cast %33 : vector<2x256xf32> to vector<1x1x2x256xf32>
    tpu.vector_store %arg5[%c0_20, %c1_21, %c0_22, %c0_23], %36 {strides = array<i32>} : memref<1x2x2x256xf32, #tpu.memory_space<vmem>>, vector<1x1x2x256xf32>,
    return
  }
  func.func @transform_0(%arg0: i32, %arg1: i32, %arg2: i32) -> (i32, i32, i32) {
    %c0_i32 = arith.constant 0 : i32
    %c0_i32_0 = arith.constant 0 : i32
    %c0_i32_1 = arith.constant 0 : i32
    return %c0_i32, %arg1, %c0_i32_0 : i32, i32, i32
  }
  func.func @transform_1(%arg0: i32, %arg1: i32, %arg2: i32) -> (i32, i32, i32, i32) {
    %c0_i32 = arith.constant 0 : i32
    %c0_i32_0 = arith.constant 0 : i32
    return %arg0, %c0_i32, %arg1, %arg2 : i32, i32, i32, i32
  }
  func.func @transform_2(%arg0: i32, %arg1: i32, %arg2: i32) -> (i32, i32, i32, i32) {
    %c0_i32 = arith.constant 0 : i32
    %c0_i32_0 = arith.constant 0 : i32
    return %arg0, %c0_i32, %arg1, %arg2 : i32, i32, i32, i32
  }
}

</mosaic_0001>

<bundles_post_ra>
// kernel: tpu_custom_call.1
= control target key start
LH: loop header
LB: loop body
LE: loop exit
PB: predicated region body
PF: predicated region fallthrough
CT: control target
= control target key end

     0   :  { %7 = vsyncpa [#allocation3], 0  ;;  %s833_s0 = inlined_call_operand.vmem [shape: f32[4,2,1], index: 0, kind: input, shape index: {}]   ;;  %s834_s1 = inlined_call_operand.hbm [shape: f32[2,2,2,256], index: 1, kind: input, shape index: {}]   ;;  %s835_s2 = inlined_call_operand.hbm [shape: f32[2,2,2,256], index: 2, kind: output, shape index: {}]  }
   0x1   :  { %9 = vsyncpa [#allocation3 + $0x1], 0 }
   0x2   :  { %10 = vsyncpa [#allocation4], 0 }
   0x3   :  { %12 = vsyncpa [#allocation4 + $0x1], 0  ;;  %s642_s9 = smov 0   ;;  %s644_s10 = smov 0  }
   0x4   :  { %s646_s11 = smov 0   ;;  %s648_s12 = smov 0  }
   0x5   :  { %s650_s13 = smov 0   ;;  %s652_s14 = smov 0  }
   0x6 LB: > { %s412_s15 = sadd.s32 4294967295, %s617_s14   ;;  %s413_s16 = sadd.s32 4294967294, %s617_s14   ;;  %s617_s14 = sphi %s652_s14, %s18_s14   ;;  %s613_s13 = sphi %s650_s13, %s850_s13   ;;  %s609_s12 = sphi %s648_s12, %s849_s12   ;;  %s605_s11 = sphi %s646_s11, %s848_s11   ;;  %s601_s10 = sphi %s644_s10, %s847_s10   ;;  %s597_s9 = sphi %s642_s9, %s846_s9  }
   0x7   : > { %s37_s17 = sadd.s32 1, %s613_s13  ;;  %s74_s18 = sadd.s32 1, %s605_s11 }
   0x8   : > { %p39_p0 = scmp.ge.s32.totalorder %s37_s17, 2  ;;  %p81_p1 = scmp.ne.s32.totalorder %s605_s11, %s601_s10 }
   0x9   : > { %p82_p2 = scmp.eq.s32.totalorder %s617_s14, 0  ;;  %p87_p3 = scmp.ne.s32.totalorder %s601_s10, %s597_s9 }
   0xa   : > { %s852_s17 = smov (%p39_p0, %s37_s17), 0  ;;  %p88_p5 = scmp.eq.s32.totalorder %s412_s15, 0 }
   0xb   : > { %p683_p4 = por %p82_p2, %p81_p1  ;;  %s67_s20 = ssub.s32 %s613_s13, %s852_s17 }
   0xc   : > { %p115_p6 = scmp.eq.s32.totalorder %s412_s15, 1  ;;  %p72_p7 = scmp.eq.s32.totalorder %s67_s20, 0 }
   0xd   : > { %p689_p8 = por %p88_p5, %p87_p3  ;;  %p121_p10 = scmp.eq.s32.totalorder %s413_s16, 1 }
   0xe   : > { %p693_p9 = por %p115_p6, %p81_p1  ;;  %p447_p13 = scmp.lt.s32.totalorder %s617_s14, 2 }
   0xf   : > { %s698_s23 = scalar_select %p72_p7, %s605_s11, %s74_s18  }
  0x10   : > { %s839_s22 = scalar_select %p693_p9, 1, 0 }
  0x11   : > { %p700_p11 = por %p121_p10, %p87_p3  ;;  %s148_s25 = sand.u32 1, %s605_s11  }
  0x12   : > { %s417_s26 = sshll.u32 %s148_s25, 3  ;;  %s433_s27 = sshll.u32 %s613_s13, 7 }
  0x13   : > { %s840_s24 = scalar_select %p700_p11, 1, 0 }
  0x14   : > { %s711_s30 = scalar_lea.hbm %s834_s1, %s433_s27  ;;  %s152_s3 = scalar_lea.vmem [#allocation2], %s417_s26 }
  0x15   : > { %s163_s4 = sshll.u32 %s152_s3, 4  ;;  %p717_p0 = pnand %p447_p13, %p683_p4  ;;  %s713_s4 = int_to_ptr.vmem [resolvable:$true] %s163_s4 }
  0x16   : > { %s722_s6 = scalar_lea.sflag [#allocation3], %s148_s25  ;;  %s505_s7 = scalar_lea.hbm %s711_s30, 128 }
  0x17   : > { %p506_p2 = scmp.ne.s32.totalorder %s711_s30, %s505_s7  ;;  %p507_p3 = pneg %p717_p0 }
  0x18   : > { %s510_s16 = scalar_lea.hbm %s834_s1, 256  ;;  %p511_p4 = scmp.lt.u32.totalorder %s711_s30, %s834_s1 }
  0x19   : > { %p508_p5 = pnand %p507_p3, %p506_p2  ;;  %p512_p7 = scmp.lt.u32.totalorder %s510_s16, %s505_s7 }
  0x1a   : > { %p514_p13 = scmp.lt.u32.totalorder %s505_s7, %s711_s30 }
  0x1b   : > { %p509_p6 = pneg %p508_p5  ;;  %p513_p10 = por %p512_p7, %p511_p4 }
  0x1d   : > { %p515_p12 = por %p514_p13, %p513_p10 }
  0x1f   : > { %p516_p1 = pnand %p515_p12, %p509_p6 }
  0x21   : > { %519 = shalt.err (!%p516_p1)
}
  0x22   : > { %s520_s20 = scalar_lea.vmem %s713_s4, 128  ;;  %s619_s25 = smov [#allocation2]  }
  0x23   : > { %p521_p2 = scmp.ne.s32.totalorder %s713_s4, %s520_s20  ;;  %s525_s26 = sshll.u32 %s619_s25, 4  ;;  %s526_s26 = int_to_ptr.vmem [resolvable:$false] %s525_s26 }
  0x24   : > { %s527_s27 = scalar_lea.vmem %s526_s26, 256  ;;  %p528_p9 = scmp.lt.s32.totalorder %s713_s4, %s526_s26 }
  0x25   : > { %p523_p5 = pnand %p521_p2, %p507_p3  ;;  %p529_p4 = scmp.lt.s32.totalorder %s527_s27, %s520_s20 }
  0x27   : > { %p524_p11 = pneg %p523_p5  ;;  %p530_p7 = por %p529_p4, %p528_p9 }
  0x29   : > { %p531_p10 = pnand %p530_p7, %p524_p11 }
  0x2b   : > { %534 = shalt.err (!%p531_p10)
}
  0x2c   : > { %s620_s28 = smov 64   ;;  %s621_s29 = smov 4  }
  0x2d   : > { %442 = dma.hbm_to_vmem [thread:$0]  (!%p717_p0), %s711_s30, 128, %s713_s4, %s722_s6, %s620_s28, %s620_s28, %s621_s29  }
  0x2e   : > { %p171_p12 = scmp.lt.s32.totalorder %s617_s14, 3  ;;  %p842_p1 = scmp.ge.s32.totalorder %s617_s14, 1 }
  0x30   : > { %p172_p3 = pnand %p842_p1, %p171_p12 }
  0x31   : > { %s754_s3 = sand.u32 (!%p172_p3), 1, %s601_s10  }
  0x32   : > { %175 = sbr.rel (%p172_p3) target bundleno = 215 (0xd7), region = 28  ;;  %s421_s7 = sshll.u32 (!%p172_p3), %s754_s3, 3 }
  0x33   : > { %s178_s8 = scalar_lea.sflag (!%p172_p3), [#allocation3], %s754_s3  ;;  %s181_s15 = scalar_lea.vmem (!%p172_p3), [#allocation2], %s421_s7 }
  0x39   : > { %588 = dma.done.wait (%p689_p8), %s178_s8, 128  }
  0x3a   : > { %590 = vsyncadd (%p689_p8), %s178_s8, 4294967168  ;;  %v622_v0 = vmov 0   ;;  %v426_v1 = vld [vmem:[%s833_s0 + $0x6] sm:$0x3]  ;;  %v215_v2 = vld [vmem:[%s833_s0] sm:$0x3]  ;;  %v229_v7 = vlaneseq }
  0x3b   : > { %504 = vset.pattern.permute.xlu1 %v622_v0  ;;  %503 = vset.pattern.permute.xlu0 %v622_v0  ;;  %v425_v3 = vld [vmem:[%s833_s0 + $0x4] sm:$0x3]  ;;  %v424_v4 = vld [vmem:[%s833_s0 + $0x2] sm:$0x3]  ;;  %v623_v5 = vmov 269488144  }
  0x3c   : > { %251 = vperm.xlu1 %504, %v426_v1   ;;  %224 = vperm.xlu0 %503, %v215_v2   ;;  %v227_v6 = vunpack.c.l.s4 %v623_v5  ;;  %v230_v9 = vshrl.u32 %v229_v7, 7  ;;  %v212_v14 = vld [vmem:[%s181_s15] sm:$0xf]  ;;  %v423_v15 = vld [vmem:[%s181_s15 + $0x4] sm:$0xf]  ;;  %s205_s20 = scalar_lea.vmem [#allocation5], %s421_s7 }
  0x3d   : > { %s303_s25 = sshll.u32 %s205_s20, 4  ;;  %s434_s26 = sshll.u32 %s609_s12, 7  ;;  %s779_s25 = int_to_ptr.vmem [resolvable:$true] %s303_s25 }
  0x3e   : > { %v228_v8 = vunpack.c.0.s8 %v227_v6  ;;  %s784_s29 = scalar_lea.hbm %s835_s2, %s434_s26  ;;  %s286_s7 = scalar_lea.sflag [#allocation4], %s754_s3 }
  0x3f   : > { %s535_s12 = scalar_lea.vmem %s779_s25, 128  ;;  %p843_p9 = scmp.ne.s32.totalorder %s839_s22, 0 }
  0x40   : > { %264 = vperm.xlu1 %504, %v425_v3   ;;  %237 = vperm.xlu0 %503, %v424_v4   ;;  %v231_v10 = vsub.s32 %v228_v8, %v230_v9  ;;  %p536_p8 = scmp.ne.s32.totalorder %s779_s25, %s535_s12  ;;  %s624_s8 = smov [#allocation5]  }
  0x41   : > { %s539_s15 = sshll.u32 %s624_s8, 4  ;;  %s540_s15 = int_to_ptr.vmem [resolvable:$false] %s539_s15 }
  0x42   : > { %p537_p11 = pnand %p536_p8, %p843_p9  ;;  %s541_s30 = scalar_lea.vmem %s540_s15, 256 }
  0x43   : > { %p542_p6 = scmp.lt.s32.totalorder %s779_s25, %s540_s15  ;;  %p543_p13 = scmp.lt.s32.totalorder %s541_s30, %s535_s12 }
  0x44   : > { %p538_p0 = pneg %p537_p11 }
  0x45   : > { %p544_p2 = por %p543_p13, %p542_p6 }
  0x47   : > { %p545_p5 = pnand %p544_p2, %p538_p0 }
  0xbb   : > { %v252_v11 = vpop.permute.xlu1 %251  ;;  %v225_v12 = vpop.permute.xlu0 %224 }
  0xbc   : > { %v259_v13 = vrot.slane %v252_v11, %v231_v10  ;;  %v232_v16 = vrot.slane %v225_v12, %v231_v10 }
  0xbe   : > { %v261_v21 = vmul.f32 %v259_v13, %v212_v14  ;;  %v277_v22 = vmul.f32 %v423_v15, %v259_v13  ;;  %v234_v23 = vmul.f32 %v232_v16, %v212_v14 }
  0xbf   : > { %v265_v17 = vpop.permute.xlu1 %264  ;;  %v238_v18 = vpop.permute.xlu0 %237 }
  0xc0   : > { %v272_v19 = vrot.slane %v265_v17, %v231_v10  ;;  %v245_v20 = vrot.slane %v238_v18, %v231_v10 }
  0xc2   : > { %v274_v24 = vmul.f32 %v423_v15, %v272_v19  ;;  %v276_v25 = vmul.f32 %v272_v19, %v212_v14  ;;  %v247_v26 = vmul.f32 %v423_v15, %v245_v20 }
  0xc4   : > { %v275_v27 = vadd.f32 %v274_v24, %v261_v21  ;;  %v278_v28 = vsub.f32 %v276_v25, %v277_v22  ;;  %v248_v29 = vsub.f32 %v234_v23, %v247_v26 }
  0xc6   : > { %vm279_vm0 = vcmp.gt.f32.partialorder %v248_v29, 0.0 }
  0xc7   : > { %v280_v30 = vsel %vm279_vm0, %v275_v27, %v212_v14  ;;  %v282_v31 = vsel %vm279_vm0, %v278_v28, %v423_v15 }
  0xc8   : > { %281 = vst [vmem:[%s205_s20] sm:$0xf] %v280_v30  ;;  %427 = vst [vmem:[%s205_s20 + $0x4] sm:$0xf] %v282_v31 }
  0xc9   : > { %548 = shalt.err (!%p545_p5)
}
  0xca   : > { %s549_s4 = scalar_lea.hbm %s784_s29, 128  ;;  %s553_s16 = scalar_lea.hbm %s835_s2, 256 }
  0xcb   : > { %p550_p4 = scmp.ne.s32.totalorder %s784_s29, %s549_s4  ;;  %p554_p12 = scmp.lt.u32.totalorder %s784_s29, %s835_s2 }
  0xcc   : > { %p555_p1 = scmp.lt.u32.totalorder %s553_s16, %s549_s4  ;;  %p557_p8 = scmp.lt.u32.totalorder %s549_s4, %s784_s29 }
  0xcd   : > { %p551_p7 = pnand %p550_p4, %p843_p9 }
  0xce   : > { %p556_p3 = por %p555_p1, %p554_p12 }
  0xcf   : > { %p552_p10 = pneg %p551_p7 }
  0xd0   : > { %p558_p11 = por %p557_p8, %p556_p3 }
  0xd2   : > { %p559_p0 = pnand %p558_p11, %p552_p10 }
  0xd4   : > { %562 = shalt.err (!%p559_p0)
}
  0xd5   : > { %s625_s21 = smov 64   ;;  %s626_s20 = smov 4  }
  0xd6   : > { %437 = dma.vmem_to_hbm [thread:$0]  (%p843_p9), %s779_s25, 128, %s784_s29, %s286_s7, %s625_s21, %s625_s21, %s626_s20  }
  0xd7 PF: > { %s318_s26 = sand.u32 1, %s597_s9   ;;  %p844_p6 = scmp.ne.s32.totalorder %s840_s24, 0 }
  0xd8   : > { %p845_p13 = scmp.ge.s32.totalorder %s617_s14, 2  ;;  %s319_s27 = scalar_lea.sflag [#allocation4], %s318_s26 }
  0xda   : > { %p444_p2 = pnand %p845_p13, %p844_p6 }
  0xdc   : > { %592 = dma.done.wait (!%p444_p2), %s319_s27, 128  }
  0xdd   : > { %594 = vsyncadd (!%p444_p2), %s319_s27, 4294967168  ;;  %s18_s14 = sadd.s32 1, %s617_s14   ;;  %s846_s9 = smov %s601_s10 }
  0xde   : > { %p15_p5 = scmp.ge.s32.totalorder %s18_s14, 4   ;;  %s847_s10 = smov %s605_s11 }
  0xdf   : > { %s848_s11 = smov %s698_s23  ;;  %s849_s12 = smov %s613_s13 }
  0xe0   : > { %s850_s13 = smov %s852_s17  ;;  %17 = sbr.rel (!%p15_p5) target bundleno = 6 (0x6), region = 81 }
  0xe7   :  { %324 = vsyncpa [#allocation3], 1 }
  0xe8   :  { %326 = vsyncpa [#allocation3 + $0x1], 1 }
  0xe9   :  { %327 = vsyncpa [#allocation4], 1 }
  0xea   :  { %329 = vsyncpa [#allocation4 + $0x1], 1 }

</bundles_post_ra>
